<compile_context>
chip_gen: v7x
topology: tpu7x:2x2x1
jax: 0.10.0
libtpu: 0.0.40
codegen_flags: <defaults>
</compile_context>

<pallas_src>
import jax
import jax.numpy as jnp
from jax.experimental import pallas as pl
from jax.experimental.pallas import tpu as pltpu


# ----------------------------- parameter packing -----------------------------

def _pack_params(layer_params, kernel_size, c0, c0_pad):
    """Pack every layer's parameters into one 2-D f32 slab + static metadata.

    Slab layout: a vertical stack of 2-D blocks, each block's row allocation
    padded to a multiple of 8 (so all static row offsets are sublane-aligned).
    Per layer (in order): combined conv1[+downsample] weight, combined bias,
    conv2 weight, conv2 bias.
    Returns (slab, layer_specs) where layer_specs is a tuple of
    (dilation, has_ds, cin, cout, off_w1, off_b1, off_w2, off_b2) Python ints.
    """
    K = kernel_size
    blocks = []          # (array, padded_rows)
    row = 0
    width = 1
    layer_specs = []

    def add(arr):
        nonlocal row, width
        arr = jnp.asarray(arr, jnp.float32)
        off = row
        r, c = arr.shape
        r_pad = ((r + 7) // 8) * 8
        blocks.append((arr, r_pad))
        row += r_pad
        width = max(width, c)
        return off

    in_ch_pad = c0_pad
    for i, p in enumerate(layer_params):
        d = 2 ** i
        w1 = jnp.asarray(p["conv1_w"], jnp.float32)        # (Cout, Cin, K)
        w2 = jnp.asarray(p["conv2_w"], jnp.float32)        # (Cout, Cout, K)
        b1 = jnp.asarray(p["conv1_b"], jnp.float32)
        b2 = jnp.asarray(p["conv2_b"], jnp.float32)
        cout = w1.shape[0]
        has_ds = "down_w" in p
        cin = in_ch_pad

        if w1.shape[1] != cin:                              # layer-0 channel pad
            w1 = jnp.pad(w1, ((0, 0), (0, cin - w1.shape[1]), (0, 0)))
        # (Cout, Cin, K) -> (Cout, K*Cin); column block k == w1[:, :, k]
        w1f = jnp.transpose(w1, (0, 2, 1)).reshape(cout, K * cin)

        if has_ds:
            wd = jnp.asarray(p["down_w"], jnp.float32)[:, :, 0]      # (Cout, Cin)
            if wd.shape[1] != cin:
                wd = jnp.pad(wd, ((0, 0), (0, cin - wd.shape[1])))
            bd = jnp.asarray(p["down_b"], jnp.float32)
            # downsample consumes the UNshifted input -> tap block k = K-1
            wd_row = jnp.concatenate(
                [jnp.zeros((cout, (K - 1) * cin), jnp.float32), wd], axis=1)
            wc = jnp.concatenate([w1f, wd_row], axis=0)               # (2Cout,K*Cin)
            bc = jnp.concatenate([b1, bd]).reshape(2 * cout, 1)
        else:
            wc = w1f
            bc = b1.reshape(cout, 1)

        w2f = jnp.transpose(w2, (0, 2, 1)).reshape(cout, K * cout)

        off_w1 = add(wc)
        off_b1 = add(bc)
        off_w2 = add(w2f)
        off_b2 = add(b2.reshape(cout, 1))
        layer_specs.append((d, has_ds, cin, cout, off_w1, off_b1, off_w2, off_b2))
        in_ch_pad = cout

    parts = [
        jnp.pad(a, ((0, r_pad - a.shape[0]), (0, width - a.shape[1])))
        for a, r_pad in blocks
    ]
    slab = jnp.concatenate(parts, axis=0)
    return slab, tuple(layer_specs)


# ---------------------------------- kernel ----------------------------------

def make_tcn_kernel(kernel_size, seq_len, layer_specs, matmul_dtype):
    K = kernel_size

    def kernel(x_ref, p_ref, o_ref):
        cur = x_ref[...].astype(jnp.float32)                 # (C0_pad, tile_BL)
        bl = cur.shape[1]
        # Position within each length-L batch segment of the lane axis.  The
        # grid tiles on whole batch segments, so this is exact per tile.
        lane_local = jax.lax.broadcasted_iota(jnp.int32, (1, bl), 1) % seq_len

        def shift_causal(v, s):
            # v[:, t] -> v[:, t - s] within each batch segment, zero-filled.
            if s == 0:
                return v
            rolled = pltpu.roll(v, shift=s, axis=1)
            return jnp.where(lane_local >= s, rolled, 0.0)

        def rd(off, rows, cols):
            return p_ref[off:off + rows, :cols].astype(jnp.float32)

        def fused_conv(inp, d, w_off, w_rows, b_off, cin):
            # Stack the K causally-shifted activations along sublanes and do a
            # single matmul against the (w_rows, K*cin) flattened weight.
            stack = jnp.concatenate(
                [shift_causal(inp, (K - 1 - k) * d) for k in range(K)], axis=0)
            w = rd(w_off, w_rows, K * cin)
            z = jnp.dot(w.astype(matmul_dtype), stack.astype(matmul_dtype),
                        preferred_element_type=jnp.float32)
            return z + rd(b_off, w_rows, 1)

        for (d, has_ds, cin, cout, off_w1, off_b1, off_w2, off_b2) in layer_specs:
            rows1 = 2 * cout if has_ds else cout
            # conv1 (+ folded 1x1 downsample) -> chomp -> relu -> (dropout: id)
            z = fused_conv(cur, d, off_w1, rows1, off_b1, cin)
            if has_ds:
                pre1, resid = z[:cout], z[cout:]
            else:
                pre1, resid = z, cur[:cout]
            h = jnp.maximum(pre1, 0.0)
            # conv2 -> chomp -> relu -> (dropout: id)
            out = jnp.maximum(fused_conv(h, d, off_w2, cout, off_b2, cout), 0.0)
            # residual add + relu
            cur = jnp.maximum(out + resid, 0.0)

        o_ref[...] = cur.astype(o_ref.dtype)

    return kernel


# --------------------------------- wrapper -----------------------------------

def temporal_conv_net(x, layer_params, kernel_size=2, matmul_dtype=jnp.float32,
                      batch_tiles=None):
    """x: (B, C_in, L).  layer_params: list of dicts with PyTorch Conv1d layouts:
      conv1_w (Cout, Cin, K), conv1_b (Cout,), conv2_w (Cout, Cout, K),
      conv2_b (Cout,), optional down_w (Cout, Cin, 1), down_b (Cout,).
    Layer i uses dilation 2**i and padding (K-1)*2**i (then chomp), matching
    the PyTorch TemporalConvNet forward.
    """
    B, C0, L = x.shape
    BL = B * L
    c0_pad = ((C0 + 7) // 8) * 8

    # (B, C, L) -> (C, B*L): channels on sublanes, lane-dense time axis.
    # (Keep this layout across the surrounding model where possible to avoid
    # the two extra HBM passes of the transposes.)
    x2 = jnp.transpose(x, (1, 0, 2)).reshape(C0, BL)
    if c0_pad != C0:
        x2 = jnp.pad(x2, ((0, c0_pad - C0), (0, 0)))

    slab, layer_specs = _pack_params(layer_params, kernel_size, C0, c0_pad)
    c_last = layer_specs[-1][3]

    # Batch-aligned lane tiling: whole length-L segments per tile, so the
    # roll+mask causal shift never crosses a tile edge.  Two tiles feed both
    # v7x TensorCores; on v5e/v6e the extra grid step is negligible.
    if batch_tiles is None:
        batch_tiles = 2 if (B % 2 == 0 and ((B // 2) * L) % 128 == 0) else 1
    nt = batch_tiles
    tile_bl = BL // nt

    # Explicit VMEM budget (generous estimate, clamped to v7x's 64 MiB physical).
    max_ch = max(max(2 * s[3], kernel_size * s[2], kernel_size * s[3])
                 for s in layer_specs)
    est = (4 * tile_bl * max_ch * (2 * kernel_size + 6)
           + 4 * slab.size * 2
           + 4 * (c0_pad + c_last) * tile_bl * 2)
    vmem_limit = int(min(max(4 * est, 16 * 1024 * 1024), 64 * 1024 * 1024))

    out2 = pl.pallas_call(
        make_tcn_kernel(kernel_size, L, layer_specs, matmul_dtype),
        out_shape=jax.ShapeDtypeStruct((c_last, BL), x.dtype),
        grid=(nt,),
        in_specs=[
            pl.BlockSpec((c0_pad, tile_bl), lambda i: (0, i)),
            pl.BlockSpec(slab.shape, lambda i: (0, 0)),   # params stay resident
        ],
        out_specs=pl.BlockSpec((c_last, tile_bl), lambda i: (0, i)),
        compiler_params=pltpu.CompilerParams(
            dimension_semantics=("parallel",),
            vmem_limit_bytes=vmem_limit),
    )(x2, slab)

    # (C_last, B*L) -> (B, C_last, L)
    return jnp.transpose(out2.reshape(c_last, B, L), (1, 0, 2))


# ----------------------------- pure-JAX reference -----------------------------

def _conv1d_ref(x, w, b, dilation, padding):
    out = jax.lax.conv_general_dilated(
        x, w, window_strides=(1,), padding=[(padding, padding)],
        rhs_dilation=(dilation,), dimension_numbers=("NCH", "OIH", "NCH"),
        precision=jax.lax.Precision.HIGHEST)
    return out + b[None, :, None]


def temporal_conv_net_ref(x, layer_params, kernel_size=2):
    cur = x
    L = x.shape[2]
    for i, p in enumerate(layer_params):
        d = 2 ** i
        pad = (kernel_size - 1) * d
        out = _conv1d_ref(cur, p["conv1_w"], p["conv1_b"], d, pad)[:, :, :L]
        out = jnp.maximum(out, 0.0)
        out = _conv1d_ref(out, p["conv2_w"], p["conv2_b"], d, pad)[:, :, :L]
        out = jnp.maximum(out, 0.0)
        if "down_w" in p:
            res = _conv1d_ref(cur, p["down_w"], p["down_b"], 1, 0)
        else:
            res = cur
        cur = jnp.maximum(out + res, 0.0)
    return cur


if __name__ == "__main__":
    # TemporalConvNet(num_inputs=4, num_channels=[32, 32], kernel_size=2)
    B, C0, L = 2, 4, 128
    num_channels = [32, 32]
    kernel_size = 2

    key = jax.random.PRNGKey(0)
    keys = jax.random.split(key, 16)

    layer_params = []
    ki = 0
    in_ch = C0
    for out_ch in num_channels:
        p = {
            "conv1_w": jax.random.normal(
                keys[ki], (out_ch, in_ch, kernel_size), jnp.float32) * 0.01,
            "conv1_b": jax.random.normal(keys[ki + 1], (out_ch,), jnp.float32) * 0.1,
            "conv2_w": jax.random.normal(
                keys[ki + 2], (out_ch, out_ch, kernel_size), jnp.float32) * 0.01,
            "conv2_b": jax.random.normal(keys[ki + 3], (out_ch,), jnp.float32) * 0.1,
        }
        ki += 4
        if in_ch != out_ch:
            p["down_w"] = jax.random.normal(
                keys[ki], (out_ch, in_ch, 1), jnp.float32) * 0.01
            p["down_b"] = jax.random.normal(keys[ki + 1], (out_ch,), jnp.float32) * 0.1
            ki += 2
        layer_params.append(p)
        in_ch = out_ch

    x = jax.random.normal(keys[ki], (B, C0, L), dtype=jnp.float32)

    out = temporal_conv_net(x, layer_params, kernel_size=kernel_size)
    out = jax.block_until_ready(out)

    ref = temporal_conv_net_ref(x, layer_params, kernel_size=kernel_size)
    assert out.shape == ref.shape == (B, num_channels[-1], L)
    max_err = jnp.max(jnp.abs(out - ref))
    assert jnp.allclose(out, ref, atol=1e-4, rtol=1e-4), f"mismatch vs reference: {max_err}"

    print("KERNEL_OK")
</pallas_src>

<mosaic_0001>
module attributes {stable_mosaic.version = 11 : i64} {
  func.func @kernel(%arg0: i32, %arg1: memref<8x128xf32, #tpu.memory_space<vmem>>, %arg2: memref<320x64xf32, #tpu.memory_space<vmem>>, %arg3: memref<32x128xf32, #tpu.memory_space<vmem>>) attributes {dimension_semantics = [#tpu.dimension_semantics<parallel>], iteration_bounds = array<i64: 2>, scalar_prefetch = 0 : i64, scratch_operands = 0 : i64, tpu.core_type = #tpu.core_type<tc>, window_params = [{transform_indices = @transform_0, window_bounds = array<i64: 8, 128>}, {pipeline_mode = #tpu.pipeline_mode<synchronous>, transform_indices = @transform_1, window_bounds = array<i64: 320, 64>}, {transform_indices = @transform_2, window_bounds = array<i64: 32, 128>}]} {
    %c0 = arith.constant 0 : index
    %c0_0 = arith.constant 0 : index
    %0 = vector.load %arg1[%c0, %c0_0] : memref<8x128xf32, #tpu.memory_space<vmem>>, vector<8x128xf32>
    %1 = tpu.iota {dimensions = array<i32: 1>} : vector<1x128xi32>
    %c128_i32 = arith.constant 128 : i32
    %c0_i32 = arith.constant 0 : i32
    %2 = arith.cmpi eq, %c128_i32, %c0_i32 : i32
    %c1_i32 = arith.constant 1 : i32
    %3 = arith.select %2, %c1_i32, %c128_i32 : i32
    %4 = vector.broadcast %3 : i32 to vector<1x128xi32>
    %5 = arith.remsi %1, %4 : vector<1x128xi32>
    %c0_i32_1 = arith.constant 0 : i32
    %6 = vector.broadcast %c0_i32_1 : i32 to vector<1x128xi32>
    %7 = arith.cmpi ne, %5, %6 : vector<1x128xi32>
    %c0_i32_2 = arith.constant 0 : i32
    %8 = vector.broadcast %c0_i32_2 : i32 to vector<1x128xi32>
    %9 = arith.cmpi slt, %5, %8 : vector<1x128xi32>
    %c0_i32_3 = arith.constant 0 : i32
    %10 = arith.cmpi slt, %3, %c0_i32_3 : i32
    %11 = vector.broadcast %10 : i1 to vector<1x128xi1>
    %12 = vector.broadcast %11 : vector<1x128xi1> to vector<1x128xi1>
    %13 = arith.xori %9, %12 : vector<1x128xi1>
    %14 = arith.andi %13, %7 : vector<1x128xi1>
    %15 = vector.broadcast %3 : i32 to vector<1x128xi32>
    %16 = arith.addi %5, %15 : vector<1x128xi32>
    %17 = arith.select %14, %16, %5 : vector<1x128xi1>, vector<1x128xi32>
    %c1_i32_4 = arith.constant 1 : i32
    %18 = tpu.dynamic_rotate %0 by %c1_i32_4 dim 1 : vector<8x128xf32>, i32 -> vector<8x128xf32>
    %c1_i32_5 = arith.constant 1 : i32
    %19 = vector.broadcast %c1_i32_5 : i32 to vector<1x128xi32>
    %20 = arith.cmpi sge, %17, %19 : vector<1x128xi32>
    %cst = arith.constant 0.000000e+00 : f32
    %21 = vector.shape_cast %20 : vector<1x128xi1> to vector<1x128xi1>
    %22 = vector.broadcast %21 : vector<1x128xi1> to vector<8x128xi1>
    %23 = vector.broadcast %cst : f32 to vector<8x128xf32>
    %24 = arith.select %22, %18, %23 : vector<8x128xi1>, vector<8x128xf32>
    %25 = tpu.concatenate %24, %0 in 0 : vector<8x128xf32>, vector<8x128xf32> -> vector<16x128xf32>
    %c0_6 = arith.constant 0 : index
    %c0_7 = arith.constant 0 : index
    %26 = vector.load %arg2[%c0_6, %c0_7] : memref<320x64xf32, #tpu.memory_space<vmem>>, vector<64x16xf32>
    %cst_8 = arith.constant dense<0.000000e+00> : vector<64x128xf32>
    %27 = tpu.matmul %26, %25, %cst_8 {dimension_numbers = #tpu.dot_dimension_numbers<[1], [0], [0], [1], [0, 0, 1, 1], [], []>} : vector<64x16xf32>, vector<16x128xf32>, vector<64x128xf32> -> vector<64x128xf32>
    %c64 = arith.constant 64 : index
    %c0_9 = arith.constant 0 : index
    %28 = vector.load %arg2[%c64, %c0_9] : memref<320x64xf32, #tpu.memory_space<vmem>>, vector<64x1xf32>
    %29 = vector.broadcast %28 : vector<64x1xf32> to vector<64x128xf32>
    %30 = arith.addf %27, %29 : vector<64x128xf32>
    %31 = vector.extract_strided_slice %30 {offsets = [0, 0], sizes = [32, 128], strides = [1, 1]} : vector<64x128xf32> to vector<32x128xf32>
    %32 = vector.extract_strided_slice %30 {offsets = [32, 0], sizes = [32, 128], strides = [1, 1]} : vector<64x128xf32> to vector<32x128xf32>
    %cst_10 = arith.constant 0.000000e+00 : f32
    %33 = vector.broadcast %cst_10 : f32 to vector<32x128xf32>
    %34 = arith.maximumf %31, %33 : vector<32x128xf32>
    %c1_i32_11 = arith.constant 1 : i32
    %35 = tpu.dynamic_rotate %34 by %c1_i32_11 dim 1 : vector<32x128xf32>, i32 -> vector<32x128xf32>
    %c1_i32_12 = arith.constant 1 : i32
    %36 = vector.broadcast %c1_i32_12 : i32 to vector<1x128xi32>
    %37 = arith.cmpi sge, %17, %36 : vector<1x128xi32>
    %cst_13 = arith.constant 0.000000e+00 : f32
    %38 = vector.shape_cast %37 : vector<1x128xi1> to vector<1x128xi1>
    %39 = vector.broadcast %38 : vector<1x128xi1> to vector<32x128xi1>
    %40 = vector.broadcast %cst_13 : f32 to vector<32x128xf32>
    %41 = arith.select %39, %35, %40 : vector<32x128xi1>, vector<32x128xf32>
    %42 = tpu.concatenate %41, %34 in 0 : vector<32x128xf32>, vector<32x128xf32> -> vector<64x128xf32>
    %c128 = arith.constant 128 : index
    %c0_14 = arith.constant 0 : index
    %43 = vector.load %arg2[%c128, %c0_14] : memref<320x64xf32, #tpu.memory_space<vmem>>, vector<32x64xf32>
    %cst_15 = arith.constant dense<0.000000e+00> : vector<32x128xf32>
    %44 = tpu.matmul %43, %42, %cst_15 {dimension_numbers = #tpu.dot_dimension_numbers<[1], [0], [0], [1], [0, 0, 1, 1], [], []>} : vector<32x64xf32>, vector<64x128xf32>, vector<32x128xf32> -> vector<32x128xf32>
    %c160 = arith.constant 160 : index
    %c0_16 = arith.constant 0 : index
    %45 = vector.load %arg2[%c160, %c0_16] : memref<320x64xf32, #tpu.memory_space<vmem>>, vector<32x1xf32>
    %46 = vector.broadcast %45 : vector<32x1xf32> to vector<32x128xf32>
    %47 = arith.addf %44, %46 : vector<32x128xf32>
    %cst_17 = arith.constant 0.000000e+00 : f32
    %48 = vector.broadcast %cst_17 : f32 to vector<32x128xf32>
    %49 = arith.maximumf %47, %48 : vector<32x128xf32>
    %50 = arith.addf %49, %32 : vector<32x128xf32>
    %cst_18 = arith.constant 0.000000e+00 : f32
    %51 = vector.broadcast %cst_18 : f32 to vector<32x128xf32>
    %52 = arith.maximumf %50, %51 : vector<32x128xf32>
    %c2_i32 = arith.constant 2 : i32
    %53 = tpu.dynamic_rotate %52 by %c2_i32 dim 1 : vector<32x128xf32>, i32 -> vector<32x128xf32>
    %c2_i32_19 = arith.constant 2 : i32
    %54 = vector.broadcast %c2_i32_19 : i32 to vector<1x128xi32>
    %55 = arith.cmpi sge, %17, %54 : vector<1x128xi32>
    %cst_20 = arith.constant 0.000000e+00 : f32
    %56 = vector.shape_cast %55 : vector<1x128xi1> to vector<1x128xi1>
    %57 = vector.broadcast %56 : vector<1x128xi1> to vector<32x128xi1>
    %58 = vector.broadcast %cst_20 : f32 to vector<32x128xf32>
    %59 = arith.select %57, %53, %58 : vector<32x128xi1>, vector<32x128xf32>
    %60 = tpu.concatenate %59, %52 in 0 : vector<32x128xf32>, vector<32x128xf32> -> vector<64x128xf32>
    %c192 = arith.constant 192 : index
    %c0_21 = arith.constant 0 : index
    %61 = vector.load %arg2[%c192, %c0_21] : memref<320x64xf32, #tpu.memory_space<vmem>>, vector<32x64xf32>
    %cst_22 = arith.constant dense<0.000000e+00> : vector<32x128xf32>
    %62 = tpu.matmul %61, %60, %cst_22 {dimension_numbers = #tpu.dot_dimension_numbers<[1], [0], [0], [1], [0, 0, 1, 1], [], []>} : vector<32x64xf32>, vector<64x128xf32>, vector<32x128xf32> -> vector<32x128xf32>
    %c224 = arith.constant 224 : index
    %c0_23 = arith.constant 0 : index
    %63 = vector.load %arg2[%c224, %c0_23] : memref<320x64xf32, #tpu.memory_space<vmem>>, vector<32x1xf32>
    %64 = vector.broadcast %63 : vector<32x1xf32> to vector<32x128xf32>
    %65 = arith.addf %62, %64 : vector<32x128xf32>
    %cst_24 = arith.constant 0.000000e+00 : f32
    %66 = vector.broadcast %cst_24 : f32 to vector<32x128xf32>
    %67 = arith.maximumf %65, %66 : vector<32x128xf32>
    %c2_i32_25 = arith.constant 2 : i32
    %68 = tpu.dynamic_rotate %67 by %c2_i32_25 dim 1 : vector<32x128xf32>, i32 -> vector<32x128xf32>
    %c2_i32_26 = arith.constant 2 : i32
    %69 = vector.broadcast %c2_i32_26 : i32 to vector<1x128xi32>
    %70 = arith.cmpi sge, %17, %69 : vector<1x128xi32>
    %cst_27 = arith.constant 0.000000e+00 : f32
    %71 = vector.shape_cast %70 : vector<1x128xi1> to vector<1x128xi1>
    %72 = vector.broadcast %71 : vector<1x128xi1> to vector<32x128xi1>
    %73 = vector.broadcast %cst_27 : f32 to vector<32x128xf32>
    %74 = arith.select %72, %68, %73 : vector<32x128xi1>, vector<32x128xf32>
    %75 = tpu.concatenate %74, %67 in 0 : vector<32x128xf32>, vector<32x128xf32> -> vector<64x128xf32>
    %c256 = arith.constant 256 : index
    %c0_28 = arith.constant 0 : index
    %76 = vector.load %arg2[%c256, %c0_28] : memref<320x64xf32, #tpu.memory_space<vmem>>, vector<32x64xf32>
    %cst_29 = arith.constant dense<0.000000e+00> : vector<32x128xf32>
    %77 = tpu.matmul %76, %75, %cst_29 {dimension_numbers = #tpu.dot_dimension_numbers<[1], [0], [0], [1], [0, 0, 1, 1], [], []>} : vector<32x64xf32>, vector<64x128xf32>, vector<32x128xf32> -> vector<32x128xf32>
    %c288 = arith.constant 288 : index
    %c0_30 = arith.constant 0 : index
    %78 = vector.load %arg2[%c288, %c0_30] : memref<320x64xf32, #tpu.memory_space<vmem>>, vector<32x1xf32>
    %79 = vector.broadcast %78 : vector<32x1xf32> to vector<32x128xf32>
    %80 = arith.addf %77, %79 : vector<32x128xf32>
    %cst_31 = arith.constant 0.000000e+00 : f32
    %81 = vector.broadcast %cst_31 : f32 to vector<32x128xf32>
    %82 = arith.maximumf %80, %81 : vector<32x128xf32>
    %83 = arith.addf %82, %52 : vector<32x128xf32>
    %cst_32 = arith.constant 0.000000e+00 : f32
    %84 = vector.broadcast %cst_32 : f32 to vector<32x128xf32>
    %85 = arith.maximumf %83, %84 : vector<32x128xf32>
    %c0_33 = arith.constant 0 : index
    %c0_34 = arith.constant 0 : index
    %86 = vector.load %arg3[%c0_33, %c0_34] : memref<32x128xf32, #tpu.memory_space<vmem>>, vector<32x128xf32>
    tpu.vector_store %arg3[%c0_33, %c0_34], %85 {strides = array<i32>} : memref<32x128xf32, #tpu.memory_space<vmem>>, vector<32x128xf32>,
    return
  }
  func.func @transform_0(%arg0: i32) -> (i32, i32) {
    %c0_i32 = arith.constant 0 : i32
    %c0_i32_0 = arith.constant 0 : i32
    return %c0_i32, %arg0 : i32, i32
  }
  func.func @transform_1(%arg0: i32) -> (i32, i32) {
    %c0_i32 = arith.constant 0 : i32
    %c0_i32_0 = arith.constant 0 : i32
    %c0_i32_1 = arith.constant 0 : i32
    return %c0_i32, %c0_i32_0 : i32, i32
  }
  func.func @transform_2(%arg0: i32) -> (i32, i32) {
    %c0_i32 = arith.constant 0 : i32
    %c0_i32_0 = arith.constant 0 : i32
    return %c0_i32, %arg0 : i32, i32
  }
}

</mosaic_0001>

<bundles_post_ra>
// kernel: tpu_custom_call.1
= control target key start
LH: loop header
LB: loop body
LE: loop exit
PB: predicated region body
PF: predicated region fallthrough
CT: control target
= control target key end

     0   :  { %7 = vsyncpa [#allocation3], 0  ;;  %s1577_s0 = inlined_call_operand.vmem [shape: f32[8,256], index: 0, kind: input, shape index: {}]   ;;  %s1578_s1 = inlined_call_operand.vmem [shape: f32[320,64], index: 1, kind: input, shape index: {}]   ;;  %s1579_s2 = inlined_call_operand.hbm [shape: f32[32,256], index: 2, kind: output, shape index: {}]  }
   0x1   :  { %9 = vsyncpa [#allocation3 + $0x1], 0  ;;  %s1274_s9 = smov 0   ;;  %s1276_s10 = smov 0  }
   0x2   :  { %s1278_s11 = smov 0   ;;  %s1280_s12 = smov 0  }
   0x3 LB: > { %s1295_s13 = sadd.s32 4294967295, %s1249_s12   ;;  %s872_s14 = sadd.s32 4294967294, %s1249_s12   ;;  %s1249_s12 = sphi %s1280_s12, %s1587_s12   ;;  %s1245_s11 = sphi %s1278_s11, %s1586_s11   ;;  %s1241_s10 = sphi %s1276_s10, %s1585_s10   ;;  %s1237_s9 = sphi %s1274_s9, %s1584_s9  }
   0x4   : > { %s1299_s15 = sadd.s32 1, %s1249_s12   ;;  %s69_s16 = sadd.s32 1, %s1245_s11 }
   0x5   : > { %s66_s17 = ssub.s32 %s1249_s12, %s1299_s15  ;;  %p79_p0 = scmp.ne.s32.totalorder %s1245_s11, %s1241_s10 }
   0x6   : > { %p67_p1 = scmp.eq.s32.totalorder %s66_s17, 0  ;;  %p80_p2 = scmp.eq.s32.totalorder %s1295_s13, 1 }
   0x7   : > { %p85_p3 = scmp.ne.s32.totalorder %s1241_s10, %s1237_s9  ;;  %p86_p4 = scmp.eq.s32.totalorder %s872_s14, 1 }
   0x8   : > { %s1310_s18 = scalar_select %p67_p1, %s1245_s11, %s69_s16  }
   0x9   : > { %p1312_p5 = por %p80_p2, %p79_p0  ;;  %p1316_p6 = por %p86_p4, %p85_p3 }
   0xa   : > { %p875_p7 = scmp.ge.s32.totalorder %s1249_s12, 1  ;;  %p114_p8 = scmp.lt.s32.totalorder %s1249_s12, 3 }
   0xc   : > { %p115_p9 = pnand %p875_p7, %p114_p8 }
   0xd   : > { %p135_p10 = scmp.lt.s32.totalorder (!%p115_p9), %s1295_s13, 1  ;;  %v160_v0 = vld [vmem:[%s1578_s1] sm:$0xff] (!%p115_p9)  ;;  %vm216_vm0 = vcmask (!%p115_p9), 130048   ;;  %v169_v1 = vld [vmem:[%s1578_s1 + $0x48] sm:$0xff] (!%p115_p9)  ;;  %v1251_v2 = vmov (!%p115_p9), 0   ;;  %s1252_s30 = smov (!%p115_p9), 1   ;;  %v140_v7 = vlaneseq (!%p115_p9) }
   0xe   : > { %118 = sbr.rel (%p115_p9) target bundleno = 1454 (0x5ae), region = 28  ;;  %965 = vmatprep.mubr.msk.f32.mxu0 (!%p115_p9), %vm216_vm0, %v160_v0  ;;  %1156 = vset.pattern.permute.xlu1 (!%p115_p9), %v1251_v2  ;;  %v170_v4 = vld [vmem:[%s1578_s1 + $0x50] sm:$0xff] (!%p115_p9)  ;;  %v168_v5 = vld [vmem:[%s1578_s1 + $0x40] sm:$0xff] (!%p115_p9)  ;;  %v171_v6 = vld [vmem:[%s1578_s1 + $0x58] sm:$0xff] (!%p115_p9)  ;;  %vm1253_vm2 = vmmov (!%p115_p9), 1   ;;  %vm390_vm4 = vcmask (!%p115_p9), 523264  }
   0xf   : > { %1155 = vset.pattern.permute.xlu0 (!%p115_p9), %v1251_v2  ;;  %183 = vperm.xlu1 (!%p115_p9), %1156, %v169_v1   ;;  %v1344_v8 = vand.u32 (!%p115_p9), 127, %v140_v7  ;;  %v161_v11 = vld [vmem:[%s1578_s1 + $0x8] sm:$0xff] (!%p115_p9)  ;;  %v162_v12 = vld [vmem:[%s1578_s1 + $0x10] sm:$0xff] (!%p115_p9)  ;;  %v163_v13 = vld [vmem:[%s1578_s1 + $0x18] sm:$0xff] (!%p115_p9)  ;;  %s1254_s16 = smov (!%p115_p9), 2   ;;  %s132_s5 = sand.u32 (!%p115_p9), 1, %s1241_s10  }
  0x10   : > { %v164_v14 = vld [vmem:[%s1578_s1 + $0x20] sm:$0xff] (!%p115_p9)  ;;  %v165_v15 = vld [vmem:[%s1578_s1 + $0x28] sm:$0xff] (!%p115_p9)  ;;  %v166_v16 = vld [vmem:[%s1578_s1 + $0x30] sm:$0xff] (!%p115_p9)  ;;  %s876_s6 = sshll.u32 (!%p115_p9), %s132_s5, 5  ;;  %s912_s14 = sshll.u32 (!%p115_p9), %s1295_s13, 7 }
  0x11   : > { %vm156_vm1 = vcmp.ge.s32.totalorder (!%p115_p9), %v1344_v8, 1  ;;  %v167_v17 = vld [vmem:[%s1578_s1 + $0x38] sm:$0xff] (!%p115_p9)  ;;  %v366_v36 = vld [vmem:[%s1578_s1 + $0xa0] sm:$0xff] (!%p115_p9)  ;;  %v367_v41 = vld [vmem:[%s1578_s1 + $0xa8] sm:$0xff] (!%p115_p9)  ;;  %vm508_vm6 = vcmp.ge.s32.totalorder (!%p115_p9), %v1344_v8, 2  ;;  %s134_s7 = scalar_lea.vmem (!%p115_p9), [#allocation2], %s876_s6 }
  0x12   : > { %vm1044_vm3 = vmpackc.low (!%p115_p9), %vm1253_vm2, %vm156_vm1  ;;  %v362_v40 = vld [vmem:[%s1578_s1 + $0x80] sm:$0xff] (!%p115_p9)  ;;  %v173_v44 = vld [vmem:[%s1578_s1 + $0x68] sm:$0xff] (!%p115_p9)  ;;  %s810_s8 = sshll.u32 (!%p115_p9), %s134_s7, 4  ;;  %s1526_s8 = int_to_ptr.vmem [resolvable:$true] %s810_s8 }
  0x13   : > { %188 = vperm.xlu1 (!%p115_p9), %1156, %v170_v4   ;;  %v172_v42 = vld [vmem:[%s1578_s1 + $0x60] sm:$0xff] (!%p115_p9)  ;;  %993 = vmatprep.mubr.msk.f32.mxu1 (!%p115_p9), %vm390_vm4, %v362_v40  ;;  %v368_v45 = vld [vmem:[%s1578_s1 + $0xb0] sm:$0xff] (!%p115_p9)  ;;  %v369_v47 = vld [vmem:[%s1578_s1 + $0xb8] sm:$0xff] (!%p115_p9)  ;;  %s1187_s22 = scalar_lea.vmem (!%p115_p9), %s1526_s8, 512 }
  0x14   : > { %v174_v48 = vld [vmem:[%s1578_s1 + $0x70] sm:$0xff] (!%p115_p9)  ;;  %v175_v50 = vld [vmem:[%s1578_s1 + $0x78] sm:$0xff] (!%p115_p9)  ;;  %vm1050_vm5 = vmpackc.low (!%p115_p9), %vm156_vm1, %vm156_vm1  ;;  %p1188_p11 = scmp.ne.s32.totalorder (!%p115_p9), %s1526_s8, %s1187_s22 }
  0x15   : > { %s136_s23 = scalar_select %p135_p10, %s1295_s13, 1  ;;  %v363_v59 = vld [vmem:[%s1578_s1 + $0x88] sm:$0xff]  ;;  %v364_v60 = vld [vmem:[%s1578_s1 + $0x90] sm:$0xff]  ;;  %v365_v61 = vld [vmem:[%s1578_s1 + $0x98] sm:$0xff] }
  0x16   : > { %vm1453_vm7 = vmpackc.low %vm508_vm6, %vm508_vm6  ;;  %s1536_s13 = scalar_lea.sflag [#allocation3], %s132_s5  ;;  %p1189_p12 = pnand %p1188_p11, %p1312_p5 }
  0x17   : > { %s877_s24 = sshll.u32 %s136_s23, 3  ;;  %193 = vperm.xlu1 %1156, %v171_v6   ;;  %s1255_s23 = smov [#allocation2]  }
  0x18   : > { %s138_s29 = scalar_lea.vmem %s1577_s0, %s877_s24  ;;  %p1190_p13 = pneg %p1189_p12 }
  0x19   : > { %v139_v3 = vld [vmem:[%s138_s29] sm:$0xff]  ;;  %s1191_s24 = sshll.u32 %s1255_s23, 4  ;;  %s1192_s24 = int_to_ptr.vmem [resolvable:$false] %s1191_s24 }
  0x1a   : > { %154 = vrot.lane.b32.xlu0 %v139_v3, %s1252_s30  ;;  %s1193_s25 = scalar_lea.vmem %s1192_s24, 1024  ;;  %p1194_p0 = scmp.lt.s32.totalorder %s1526_s8, %s1192_s24 }
  0x1b   : > { %p1195_p1 = scmp.lt.s32.totalorder %s1193_s25, %s1187_s22 }
  0x1d   : > { %p1196_p2 = por %p1195_p1, %p1194_p0 }
  0x1e   : > { %178 = vperm.xlu0 %1155, %v168_v5  }
  0x1f   : > { %p1197_p3 = pnand %p1196_p2, %p1190_p13 }
  0x8c   : > { %v155_v9 = vpop.permute.xlu0 %154 }
  0x8d   : > { %v1043_v10 = vpack.c.bf16 %v139_v3, %v155_v9 }
  0x8e   : > { %v184_v18 = vpop.permute.xlu1 %183 }
  0x8f   : > { %1045 = vmatprep.subr.msk.bf16.mxu0 %vm1044_vm3, %v1043_v10 }
  0x90   : > { %1048 = vmatpush3.bf16.msk.msra.mxu0 %vm1044_vm3, %v1043_v10 }
  0x92   : > { %v189_v19 = vpop.permute.xlu1 %188 }
  0x93   : > { %966 = vmatmul.mubr.msk.f32.vlgmr.msra.gmra.mrb[0].mxu0 %vm216_vm0, %v161_v11 }
  0x94   : > { %968 = vmatprep.mubr.msk.f32.mxu0 %vm216_vm0, %v162_v12 }
  0x96   : > { %v194_v26 = vpop.permute.xlu1 %193 }
  0x97   : > { %969 = vmatmul.mubr.msk.f32.gmra.mrb[2].mxu0 %vm216_vm0, %v163_v13 }
  0x98   : > { %971 = vmatprep.mubr.msk.f32.mxu0 %vm216_vm0, %v164_v14 }
  0x9b   : > { %972 = vmatmul.mubr.msk.f32.gmra.mrb[4].mxu0 %vm216_vm0, %v165_v15 }
  0x9c   : > { %974 = vmatprep.mubr.msk.f32.mxu0 %vm216_vm0, %v166_v16 }
  0x9d   : > { %v179_v20 = vpop.permute.xlu0 %178 }
  0x9f   : > { %975 = vmatmul.mubr.msk.f32.gmra.mrb[6].mxu0 %vm216_vm0, %v167_v17 }
 0x166   : > { %v967_v21 = vpop.f32.mrb[0].mxu0 }
 0x167   : > { %v313_v22 = vadd.f32 %v967_v21, %v184_v18  ;;  %v307_v23 = vpop.f32.mrb[1].mxu0 }
 0x168   : > { %v308_v24 = vadd.f32 %v307_v23, %v179_v20 }
 0x169   : > { %v347_v25 = vmax.f32 %v313_v22, 0.0 }
 0x16a   : > { %v346_v27 = vmax.f32 %v308_v24, 0.0  ;;  %v970_v28 = vpop.f32.mrb[2].mxu0 }
 0x16b   : > { %v323_v29 = vadd.f32 %v970_v28, %v194_v26  ;;  %v317_v30 = vpop.f32.mrb[3].mxu0 }
 0x16c   : > { %v1157_v31 = vpack.i.bf16 %v347_v25, %v346_v27  ;;  %v1061_v32 = vpack.c.bf16 %v347_v25, %v346_v27  ;;  %v318_v33 = vadd.f32 %v317_v30, %v189_v19 }
 0x16d   : > { %v349_v34 = vmax.f32 %v323_v29, 0.0 }
 0x16e   : > { %v348_v35 = vmax.f32 %v318_v33, 0.0  ;;  %1158 = vrot.lane.b32.xlu0 %v1157_v31, %s1252_s30  ;;  %v973_v39 = vpop.f32.mrb[4].mxu0 }
 0x16f   : > { %v327_v43 = vpop.f32.mrb[5].mxu0 }
 0x170   : > { %v1162_v37 = vpack.i.bf16 %v349_v34, %v348_v35  ;;  %v1065_v38 = vpack.c.bf16 %v349_v34, %v348_v35  ;;  %v515_v34 = vld [vmem:[%s1578_s1 + $0xc0] sm:$0xff]  ;;  %v520_v35 = vld [vmem:[%s1578_s1 + $0xe8] sm:$0xff] }
 0x171   : > { %1015 = vmatprep.mubr.msk.f32.mxu0 %vm390_vm4, %v515_v34 }
 0x172   : > { %1163 = vrot.lane.b32.xlu1 %v1162_v37, %s1252_s30  ;;  %372 = vperm.xlu0 %1155, %v366_v36   ;;  %v976_v46 = vpop.f32.mrb[6].mxu0  ;;  %v521_v36 = vld [vmem:[%s1578_s1 + $0xf0] sm:$0xff]  ;;  %v522_v37 = vld [vmem:[%s1578_s1 + $0xf8] sm:$0xff]  ;;  %s1532_s30 = scalar_lea.hbm %s1579_s2, %s912_s14 }
 0x173   : > { %v337_v49 = vpop.f32.mrb[7].mxu0 }
 0x176   : > { %377 = vperm.xlu1 %1156, %v367_v41   ;;  %198 = vperm.xlu0 %1155, %v172_v42  }
 0x17a   : > { %203 = vperm.xlu1 %1156, %v173_v44   ;;  %382 = vperm.xlu0 %1155, %v368_v45  }
 0x17e   : > { %387 = vperm.xlu1 %1156, %v369_v47   ;;  %208 = vperm.xlu0 %1155, %v174_v48   ;;  %v516_v48 = vld [vmem:[%s1578_s1 + $0xc8] sm:$0xff] }
 0x182   : > { %213 = vperm.xlu1 %1156, %v175_v50   ;;  %v518_v50 = vld [vmem:[%s1578_s1 + $0xd8] sm:$0xff] }
 0x1e0   : > { %v1159_v51 = vpop.permute.xlu0 %1158 }
 0x1e1   : > { %v1161_v52 = vunpack.i.h.bf16 %v1159_v51  ;;  %v1160_v53 = vunpack.i.l.bf16 %v1159_v51 }
 0x1e3   : > { %v1049_v54 = vpack.c.bf16 %v1161_v52, %v1160_v53 }
 0x1e4   : > { %v1164_v55 = vpop.permute.xlu1 %1163 }
 0x1e5   : > { %v1166_v56 = vunpack.i.h.bf16 %v1164_v55  ;;  %v1165_v57 = vunpack.i.l.bf16 %v1164_v55  ;;  %1051 = vmatprep.subr.msk.bf16.mxu1 %vm1050_vm5, %v1049_v54 }
 0x1e6   : > { %1054 = vmatpush3.bf16.msk.msra.mxu1 %vm1050_vm5, %v1049_v54 }
 0x1e7   : > { %v1055_v58 = vpack.c.bf16 %v1166_v56, %v1165_v57 }
 0x1e9   : > { %1057 = vmatprep.subr.msk.bf16.mxu1 %vm1050_vm5, %v1055_v58 }
 0x1ea   : > { %1060 = vmatpush3.bf16.msk.msra.mxu1 %vm1050_vm5, %v1055_v58 }
 0x1eb   : > { %1062 = vmatprep.subr.bf16.mxu1 %v1061_v32 }
 0x1ee   : > { %1064 = vmatpush3.bf16.msra.mxu1 %v1061_v32  ;;  %v519_v32 = vld [vmem:[%s1578_s1 + $0xe0] sm:$0xff] }
 0x1ef   : > { %1066 = vmatprep.subr.bf16.mxu1 %v1065_v38 }
 0x1f1   : > { %v373_v63 = vpop.permute.xlu0 %372 }
 0x1f2   : > { %1068 = vmatpush3.bf16.msra.mxu1 %v1065_v38 }
 0x1f5   : > { %994 = vmatmul.mubr.msk.f32.vlgmr.msra.gmra.mrb[0].mxu1 %vm390_vm4, %v363_v59  ;;  %v378_v62 = vpop.permute.xlu1 %377  ;;  %v199_v1 = vpop.permute.xlu0 %198 }
 0x1f6   : > { %996 = vmatprep.mubr.msk.f32.mxu1 %vm390_vm4, %v364_v60  ;;  %v328_v11 = vadd.f32 %v327_v43, %v199_v1 }
 0x1f9   : > { %997 = vmatmul.mubr.msk.f32.gmra.mrb[2].mxu1 %vm390_vm4, %v365_v61  ;;  %v204_v0 = vpop.permute.xlu1 %203  ;;  %v383_v3 = vpop.permute.xlu0 %382 }
 0x1fa   : > { %v333_v9 = vadd.f32 %v973_v39, %v204_v0 }
 0x1fd   : > { %v388_v2 = vpop.permute.xlu1 %387  ;;  %v209_v15 = vpop.permute.xlu0 %208 }
 0x1fe   : > { %v338_v24 = vadd.f32 %v337_v49, %v209_v15  ;;  %v517_v49 = vld [vmem:[%s1578_s1 + $0xd0] sm:$0xff] }
 0x201   : > { %v214_v12 = vpop.permute.xlu1 %213 }
 0x202   : > { %v343_v21 = vadd.f32 %v976_v46, %v214_v12  ;;  %v663_v12 = vld [vmem:[%s1578_s1 + $0x138] sm:$0xff] }
 0x2c8   : > { %v995_v4 = vpop.f32.mrb[0].mxu1 }
 0x2c9   : > { %v475_v5 = vadd.f32 %v995_v4, %v378_v62  ;;  %v469_v6 = vpop.f32.mrb[1].mxu1 }
 0x2ca   : > { %v470_v7 = vadd.f32 %v469_v6, %v373_v63 }
 0x2cb   : > { %v489_v10 = vmax.f32 %v475_v5, 0.0  ;;  %v660_v5 = vld [vmem:[%s1578_s1 + $0x120] sm:$0xff] }
 0x2cc   : > { %v488_v13 = vmax.f32 %v470_v7, 0.0  ;;  %v998_v14 = vpop.f32.mrb[2].mxu1 }
 0x2cd   : > { %v493_v16 = vadd.f32 %v489_v10, %v333_v9  ;;  %v485_v17 = vadd.f32 %v998_v14, %v388_v2  ;;  %v479_v18 = vpop.f32.mrb[3].mxu1  ;;  %v656_v9 = vld [vmem:[%s1578_s1 + $0x100] sm:$0xff]  ;;  %v661_v10 = vld [vmem:[%s1578_s1 + $0x128] sm:$0xff] }
 0x2ce   : > { %v492_v19 = vadd.f32 %v488_v13, %v328_v11  ;;  %v480_v20 = vadd.f32 %v479_v18, %v383_v3  ;;  %v662_v11 = vld [vmem:[%s1578_s1 + $0x130] sm:$0xff]  ;;  %1037 = vmatprep.mubr.msk.f32.mxu1 %vm390_vm4, %v656_v9 }
 0x2cf   : > { %v1422_v22 = vmax.f32 %v493_v16, 0.0  ;;  %v491_v23 = vmax.f32 %v485_v17, 0.0 }
 0x2d0   : > { %v1424_v25 = vmax.f32 %v492_v19, 0.0  ;;  %v490_v26 = vmax.f32 %v480_v20, 0.0 }
 0x2d1   : > { %v495_v27 = vadd.f32 %v491_v23, %v343_v21  ;;  %v657_v21 = vld [vmem:[%s1578_s1 + $0x108] sm:$0xff]  ;;  %v658_v23 = vld [vmem:[%s1578_s1 + $0x110] sm:$0xff] }
 0x2d2   : > { %v494_v28 = vadd.f32 %v490_v26, %v338_v24  ;;  %v1167_v29 = vpack.i.bf16 %v1422_v22, %v1424_v25  ;;  %v1081_v8 = vpack.c.bf16 %v1422_v22, %v1424_v25  ;;  %v659_v24 = vld [vmem:[%s1578_s1 + $0x118] sm:$0xff] }
 0x2d3   : > { %v1428_v30 = vmax.f32 %v495_v27, 0.0 }
 0x2d4   : > { %v1430_v31 = vmax.f32 %v494_v28, 0.0  ;;  %1168 = vrot.lane.b32.xlu0 %v1167_v29, %s1254_s16 }
 0x2d6   : > { %v1172_v33 = vpack.i.bf16 %v1428_v30, %v1430_v31  ;;  %v1085_v47 = vpack.c.bf16 %v1428_v30, %v1430_v31 }
 0x2d8   : > { %1173 = vrot.lane.b32.xlu1 %v1172_v33, %s1254_s16  ;;  %525 = vperm.xlu0 %1155, %v519_v32  }
 0x2dc   : > { %530 = vperm.xlu1 %1156, %v520_v35   ;;  %535 = vperm.xlu0 %1155, %v521_v36  }
 0x2e0   : > { %540 = vperm.xlu1 %1156, %v522_v37  }
 0x346   : > { %v1169_v38 = vpop.permute.xlu0 %1168 }
 0x347   : > { %v1171_v39 = vunpack.i.h.bf16 %v1169_v38  ;;  %v1170_v40 = vunpack.i.l.bf16 %v1169_v38 }
 0x349   : > { %v1069_v42 = vpack.c.bf16 %v1171_v39, %v1170_v40 }
 0x34a   : > { %v1174_v43 = vpop.permute.xlu1 %1173 }
 0x34b   : > { %v1176_v44 = vunpack.i.h.bf16 %v1174_v43  ;;  %v1175_v45 = vunpack.i.l.bf16 %v1174_v43  ;;  %1071 = vmatprep.subr.msk.bf16.mxu0 %vm1453_vm7, %v1069_v42 }
 0x34c   : > { %1074 = vmatpush3.bf16.msk.msra.mxu0 %vm1453_vm7, %v1069_v42 }
 0x34d   : > { %v1075_v46 = vpack.c.bf16 %v1176_v44, %v1175_v45 }
 0x34f   : > { %1077 = vmatprep.subr.msk.bf16.mxu0 %vm1453_vm7, %v1075_v46 }
 0x350   : > { %1080 = vmatpush3.bf16.msk.msra.mxu0 %vm1453_vm7, %v1075_v46 }
 0x351   : > { %1082 = vmatprep.subr.bf16.mxu0 %v1081_v8 }
 0x354   : > { %1084 = vmatpush3.bf16.msra.mxu0 %v1081_v8 }
 0x355   : > { %1086 = vmatprep.subr.bf16.mxu0 %v1085_v47 }
 0x357   : > { %v526_v52 = vpop.permute.xlu0 %525 }
 0x358   : > { %1088 = vmatpush3.bf16.msra.mxu0 %v1085_v47 }
 0x35b   : > { %1016 = vmatmul.mubr.msk.f32.vlgmr.msra.gmra.mrb[8].mxu0 %vm390_vm4, %v516_v48  ;;  %v531_v51 = vpop.permute.xlu1 %530  ;;  %v536_v61 = vpop.permute.xlu0 %535 }
 0x35c   : > { %1018 = vmatprep.mubr.msk.f32.mxu0 %vm390_vm4, %v517_v49 }
 0x35f   : > { %1019 = vmatmul.mubr.msk.f32.gmra.mrb[10].mxu0 %vm390_vm4, %v518_v50  ;;  %v541_v58 = vpop.permute.xlu1 %540 }
 0x42e   : > { %v1017_v53 = vpop.f32.mrb[8].mxu0 }
 0x42f   : > { %v627_v54 = vadd.f32 %v1017_v53, %v531_v51  ;;  %v621_v55 = vpop.f32.mrb[9].mxu0 }
 0x430   : > { %v622_v56 = vadd.f32 %v621_v55, %v526_v52 }
 0x431   : > { %v641_v57 = vmax.f32 %v627_v54, 0.0 }
 0x432   : > { %v640_v59 = vmax.f32 %v622_v56, 0.0  ;;  %v1020_v60 = vpop.f32.mrb[10].mxu0 }
 0x433   : > { %v637_v62 = vadd.f32 %v1020_v60, %v541_v58  ;;  %v631_v63 = vpop.f32.mrb[11].mxu0 }
 0x434   : > { %v1177_v0 = vpack.i.bf16 %v641_v57, %v640_v59  ;;  %v1101_v1 = vpack.c.bf16 %v641_v57, %v640_v59  ;;  %v632_v2 = vadd.f32 %v631_v63, %v536_v61 }
 0x435   : > { %v643_v3 = vmax.f32 %v637_v62, 0.0 }
 0x436   : > { %v642_v4 = vmax.f32 %v632_v2, 0.0  ;;  %1178 = vrot.lane.b32.xlu0 %v1177_v0, %s1254_s16 }
 0x438   : > { %v1182_v6 = vpack.i.bf16 %v643_v3, %v642_v4  ;;  %v1105_v7 = vpack.c.bf16 %v643_v3, %v642_v4 }
 0x43a   : > { %1183 = vrot.lane.b32.xlu1 %v1182_v6, %s1254_s16  ;;  %666 = vperm.xlu0 %1155, %v660_v5  }
 0x43e   : > { %671 = vperm.xlu1 %1156, %v661_v10   ;;  %676 = vperm.xlu0 %1155, %v662_v11  }
 0x442   : > { %681 = vperm.xlu1 %1156, %v663_v12  }
 0x4a8   : > { %v1179_v13 = vpop.permute.xlu0 %1178 }
 0x4a9   : > { %v1181_v14 = vunpack.i.h.bf16 %v1179_v13  ;;  %v1180_v15 = vunpack.i.l.bf16 %v1179_v13 }
 0x4ab   : > { %v1089_v16 = vpack.c.bf16 %v1181_v14, %v1180_v15 }
 0x4ac   : > { %v1184_v17 = vpop.permute.xlu1 %1183 }
 0x4ad   : > { %v1186_v18 = vunpack.i.h.bf16 %v1184_v17  ;;  %v1185_v19 = vunpack.i.l.bf16 %v1184_v17  ;;  %1091 = vmatprep.subr.msk.bf16.mxu1 %vm1453_vm7, %v1089_v16 }
 0x4ae   : > { %1094 = vmatpush3.bf16.msk.msra.mxu1 %vm1453_vm7, %v1089_v16 }
 0x4af   : > { %v1095_v20 = vpack.c.bf16 %v1186_v18, %v1185_v19 }
 0x4b1   : > { %1097 = vmatprep.subr.msk.bf16.mxu1 %vm1453_vm7, %v1095_v20 }
 0x4b2   : > { %1100 = vmatpush3.bf16.msk.msra.mxu1 %vm1453_vm7, %v1095_v20 }
 0x4b3   : > { %1102 = vmatprep.subr.bf16.mxu1 %v1101_v1 }
 0x4b6   : > { %1104 = vmatpush3.bf16.msra.mxu1 %v1101_v1 }
 0x4b7   : > { %1106 = vmatprep.subr.bf16.mxu1 %v1105_v7 }
 0x4b9   : > { %v667_v27 = vpop.permute.xlu0 %666 }
 0x4ba   : > { %1108 = vmatpush3.bf16.msra.mxu1 %v1105_v7 }
 0x4bd   : > { %1038 = vmatmul.mubr.msk.f32.vlgmr.msra.gmra.mrb[4].mxu1 %vm390_vm4, %v657_v21  ;;  %v672_v26 = vpop.permute.xlu1 %671  ;;  %v677_v38 = vpop.permute.xlu0 %676 }
 0x4be   : > { %1040 = vmatprep.mubr.msk.f32.mxu1 %vm390_vm4, %v658_v23 }
 0x4c1   : > { %1041 = vmatmul.mubr.msk.f32.gmra.mrb[6].mxu1 %vm390_vm4, %v659_v24  ;;  %v682_v35 = vpop.permute.xlu1 %681 }
 0x590   : > { %v1039_v28 = vpop.f32.mrb[4].mxu1 }
 0x591   : > { %v768_v29 = vadd.f32 %v1039_v28, %v672_v26  ;;  %v762_v32 = vpop.f32.mrb[5].mxu1 }
 0x592   : > { %v763_v33 = vadd.f32 %v762_v32, %v667_v27 }
 0x593   : > { %v782_v34 = vmax.f32 %v768_v29, 0.0 }
 0x594   : > { %v781_v36 = vmax.f32 %v763_v33, 0.0  ;;  %v1042_v37 = vpop.f32.mrb[6].mxu1 }
 0x595   : > { %v786_v39 = vadd.f32 %v782_v34, %v1422_v22  ;;  %v778_v40 = vadd.f32 %v1042_v37, %v682_v35  ;;  %v772_v41 = vpop.f32.mrb[7].mxu1 }
 0x596   : > { %v785_v42 = vadd.f32 %v781_v36, %v1424_v25  ;;  %v773_v43 = vadd.f32 %v772_v41, %v677_v38 }
 0x597   : > { %v790_v44 = vmax.f32 %v786_v39, 0.0  ;;  %v784_v45 = vmax.f32 %v778_v40, 0.0 }
 0x598   : > { %v789_v46 = vmax.f32 %v785_v42, 0.0  ;;  %v783_v8 = vmax.f32 %v773_v43, 0.0 }
 0x599   : > { %794 = vst [vmem:[%s134_s7 + $0x8] sm:$0xff] %v790_v44  ;;  %v788_v47 = vadd.f32 %v784_v45, %v1428_v30 }
 0x59a   : > { %793 = vst [vmem:[%s134_s7] sm:$0xff] %v789_v46  ;;  %v787_v22 = vadd.f32 %v783_v8, %v1430_v31 }
 0x59b   : > { %v792_v25 = vmax.f32 %v788_v47, 0.0 }
 0x59c   : > { %v791_v48 = vmax.f32 %v787_v22, 0.0 }
 0x59d   : > { %796 = vst [vmem:[%s134_s7 + $0x18] sm:$0xff] %v792_v25 }
 0x59e   : > { %795 = vst [vmem:[%s134_s7 + $0x10] sm:$0xff] %v791_v48 }
 0x59f   : > { %1200 = shalt.err (!%p1197_p3)
}
 0x5a0   : > { %s1201_s26 = scalar_lea.hbm %s1532_s30, 512  ;;  %s1205_s28 = scalar_lea.hbm %s1579_s2, 1024 }
 0x5a1   : > { %p1202_p4 = scmp.ne.s32.totalorder %s1532_s30, %s1201_s26  ;;  %p1206_p9 = scmp.lt.u32.totalorder %s1532_s30, %s1579_s2 }
 0x5a2   : > { %p1207_p10 = scmp.lt.u32.totalorder %s1205_s28, %s1201_s26  ;;  %p1209_p12 = scmp.lt.u32.totalorder %s1201_s26, %s1532_s30 }
 0x5a3   : > { %p1203_p7 = pnand %p1202_p4, %p1312_p5 }
 0x5a4   : > { %p1208_p11 = por %p1207_p10, %p1206_p9 }
 0x5a5   : > { %p1204_p8 = pneg %p1203_p7 }
 0x5a6   : > { %p1210_p13 = por %p1209_p12, %p1208_p11 }
 0x5a8   : > { %p1211_p0 = pnand %p1210_p13, %p1204_p8 }
 0x5aa   : > { %1214 = shalt.err (!%p1211_p0)
}
 0x5ab   : > { %s1256_s4 = smov 128   ;;  %s1257_s5 = smov 256  }
 0x5ac   : > { %s1258_s6 = smov 8  }
 0x5ad   : > { %1109 = dma.vmem_to_hbm [thread:$0]  (%p1312_p5), %s1526_s8, 512, %s1532_s30, %s1536_s13, %s1256_s4, %s1257_s5, %s1258_s6  }
 0x5ae PF: > { %p1115_p1 = scmp.ge.s32.totalorder %s1249_s12, 2  ;;  %s825_s7 = sand.u32 1, %s1237_s9  }
 0x5af   : > { %s826_s14 = scalar_lea.sflag [#allocation3], %s825_s7 }
 0x5b0   : > { %p1112_p2 = pnand %p1115_p1, %p1316_p6 }
 0x5b2   : > { %1232 = dma.done.wait (!%p1112_p2), %s826_s14, 512  }
 0x5b3   : > { %1234 = vsyncadd (!%p1112_p2), %s826_s14, 4294966784  ;;  %p12_p3 = scmp.ge.s32.totalorder %s1299_s15, 4   ;;  %s1584_s9 = smov %s1241_s10 }
 0x5b4   : > { %s1585_s10 = smov %s1245_s11  ;;  %s1586_s11 = smov %s1310_s18 }
 0x5b5   : > { %s1587_s12 = smov %s1299_s15  ;;  %14 = sbr.rel (!%p12_p3) target bundleno = 3 (0x3), region = 63 }
 0x5bc   :  { %831 = vsyncpa [#allocation3], 1 }
 0x5bd   :  { %833 = vsyncpa [#allocation3 + $0x1], 1 }

</bundles_post_ra>
